<compile_context>
chip_gen: v5e
topology: v5e:2x2
jax: 0.10.0
libtpu: 0.0.40
codegen_flags: <defaults>
</compile_context>

<pallas_src>
import functools

import jax
import jax.numpy as jnp
from jax import lax
from jax.experimental import pallas as pl
from jax.experimental.pallas import tpu as pltpu


def _silu_fast(x):
    # SiLU with one EUP transcendental: sigmoid(x) == 0.5*tanh(0.5*x) + 0.5.
    return x * (0.5 * jnp.tanh(0.5 * x) + 0.5)


_TAPS = ((-1, -1), (-1, 0), (-1, 1),
         (0, -1), (0, 0), (0, 1),
         (1, -1), (1, 0), (1, 1))


def mv2_kernel(x_ref, w1b_ref, b1b_ref, dwm_ref, b2b_ref, w3b_ref, s3b_ref,
               b3b_ref, o_ref, *, W, use_res):
    # Lane-dense layout: x_ref is (Cin, L) with L = N*H*W on the lane axis.
    x = x_ref[...].astype(jnp.float32)
    Cin, L = x.shape
    hidden = b1b_ref.shape[0]

    # --- 1x1 expand conv (BN1 folded) + SiLU: VPU broadcast-MACs ------------
    # w1 columns are pre lane-broadcast to (hidden, L) in the wrapper; only the
    # activation row x[c] needs an (implicit) sublane broadcast here.
    h = b1b_ref[...]
    for c in range(Cin):
        h = h + w1b_ref[c] * x[c:c + 1, :]
    h = _silu_fast(h)

    # --- 3x3 depthwise conv, pad=1, stride=1 (BN2 folded) + SiLU ------------
    # Per-tap weights dwm_ref[t] are pre-masked (zero wherever the tap would
    # read outside its own image, including across the folded batch boundary)
    # and pre lane-broadcast, so each tap is roll + multiply-add.  Accumulate
    # in three row partial sums to shorten the serial dependence chain.
    row_sums = []
    for oy in (-1, 0, 1):
        r = None
        for ox in (-1, 0, 1):
            t = (oy + 1) * 3 + (ox + 1)
            if oy == 0 and ox == 0:
                tap = h
            else:
                # out[p] = h[p + oy*W + ox]  ->  roll by -(oy*W + ox) (mod L)
                tap = pltpu.roll(h, (-(oy * W + ox)) % L, axis=1)
            term = tap * dwm_ref[t]
            r = term if r is None else r + term
        row_sums.append(r)
    g = _silu_fast(b2b_ref[...] + (row_sums[0] + row_sums[1]) + row_sums[2])

    # --- 1x1 project conv -> SiLU -> BN3 affine (+ residual) ----------------
    p = w3b_ref[0] * g[0:1, :]
    for c in range(1, hidden):
        p = p + w3b_ref[c] * g[c:c + 1, :]
    p = _silu_fast(p)
    p = p * s3b_ref[...] + b3b_ref[...]
    if use_res:
        p = p + x
    o_ref[...] = p.astype(o_ref.dtype)        # single wide lane-dense store


def mv2_block(x_nchw, params, *, expansion=2, eps=1e-5):
    """Fused MV2Block forward (stride=1). x_nchw: (N, Cin, H, W)."""
    N, Cin, H, W = x_nchw.shape
    hidden = Cin * expansion
    Cout = params["w3_oihw"].shape[0]
    use_res = (Cin == Cout)          # stride == 1 in this kernel
    L = N * H * W
    f32 = jnp.float32

    # ---- fold BatchNorms (inference mode) -----------------------------------
    s1 = params["g1"] / jnp.sqrt(params["v1"] + eps)
    b1 = params["be1"] - params["m1"] * s1
    s2 = params["g2"] / jnp.sqrt(params["v2"] + eps)
    b2 = params["be2"] - params["m2"] * s2
    s3 = params["g3"] / jnp.sqrt(params["v3"] + eps)
    b3 = params["be3"] - params["m3"] * s3

    w1 = params["w1_oihw"][:, :, 0, 0] * s1[:, None]                # (hidden, Cin)
    dw = (params["dw_oihw"][:, 0] * s2[:, None, None]).reshape(hidden, 9)
    w3 = params["w3_oihw"][:, :, 0, 0]                              # (Cout, hidden)

    # ---- wrapper-side pre-broadcast / pre-masked operands (all tiny) --------
    lane = jnp.arange(L, dtype=jnp.int32)
    pos = lane % (H * W)             # pixel index inside each image
    yy = pos // W
    xx = pos % W
    masks = []
    for (oy, ox) in _TAPS:
        ok = ((yy + oy >= 0) & (yy + oy < H) &
              (xx + ox >= 0) & (xx + ox < W)).astype(f32)
        masks.append(ok)
    mask = jnp.stack(masks)                                          # (9, L)
    dwm = dw.T[:, :, None] * mask[:, None, :]                        # (9, hidden, L)

    w1b = jnp.broadcast_to(w1.T[:, :, None], (Cin, hidden, L)).astype(f32)
    w3b = jnp.broadcast_to(w3.T[:, :, None], (hidden, Cout, L)).astype(f32)
    b1b = jnp.broadcast_to(b1[:, None], (hidden, L)).astype(f32)
    b2b = jnp.broadcast_to(b2[:, None], (hidden, L)).astype(f32)
    s3b = jnp.broadcast_to(s3[:, None], (Cout, L)).astype(f32)
    b3b = jnp.broadcast_to(b3[:, None], (Cout, L)).astype(f32)

    # NCHW -> (Cin, N*H*W): channels on sublanes, batch folded onto lanes.
    x2 = jnp.transpose(x_nchw, (1, 0, 2, 3)).reshape(Cin, L)

    out2 = pl.pallas_call(
        functools.partial(mv2_kernel, W=W, use_res=use_res),
        out_shape=jax.ShapeDtypeStruct((Cout, L), x_nchw.dtype),
    )(x2, w1b, b1b, dwm, b2b, w3b, s3b, b3b)

    return jnp.transpose(out2.reshape(Cout, N, H, W), (1, 0, 2, 3))


def ref_forward(x_nchw, p, *, use_res, eps=1e-5):
    """Pure-JAX reference, written directly from the PyTorch module."""
    def bn(y, g, b, m, v):
        return (y - m[None, :, None, None]) / jnp.sqrt(v + eps)[None, :, None, None] \
               * g[None, :, None, None] + b[None, :, None, None]

    def silu(x):
        return x * jax.nn.sigmoid(x)

    dn = ("NCHW", "OIHW", "NCHW")
    y = lax.conv_general_dilated(x_nchw, p["w1_oihw"], (1, 1), "VALID",
                                 dimension_numbers=dn)
    y = silu(bn(y, p["g1"], p["be1"], p["m1"], p["v1"]))
    y = lax.conv_general_dilated(y, p["dw_oihw"], (1, 1), ((1, 1), (1, 1)),
                                 feature_group_count=p["dw_oihw"].shape[0],
                                 dimension_numbers=dn)
    y = silu(bn(y, p["g2"], p["be2"], p["m2"], p["v2"]))
    y = lax.conv_general_dilated(y, p["w3_oihw"], (1, 1), "VALID",
                                 dimension_numbers=dn)
    y = silu(y)
    y = bn(y, p["g3"], p["be3"], p["m3"], p["v3"])
    return x_nchw + y if use_res else y


if __name__ == "__main__":
    # Small config: inp=out=4, stride=1, expansion=2 -> hidden=8, residual on.
    N, Cin, H, W = 2, 4, 16, 16
    Cout, expansion = 4, 2
    hidden = Cin * expansion
    use_res = True  # stride==1 and inp==out

    key = jax.random.PRNGKey(0)
    ks = jax.random.split(key, 16)
    f32 = jnp.float32

    x_nchw = jax.random.normal(ks[0], (N, Cin, H, W), f32)

    params = dict(
        w1_oihw=jax.random.normal(ks[1], (hidden, Cin, 1, 1), f32) * 0.2,
        dw_oihw=jax.random.normal(ks[2], (hidden, 1, 3, 3), f32) * 0.2,
        w3_oihw=jax.random.normal(ks[3], (Cout, hidden, 1, 1), f32) * 0.2,
        g1=1.0 + 0.1 * jax.random.normal(ks[4], (hidden,), f32),
        be1=0.1 * jax.random.normal(ks[5], (hidden,), f32),
        m1=0.1 * jax.random.normal(ks[6], (hidden,), f32),
        v1=0.5 + jnp.abs(jax.random.normal(ks[7], (hidden,), f32)),
        g2=1.0 + 0.1 * jax.random.normal(ks[8], (hidden,), f32),
        be2=0.1 * jax.random.normal(ks[9], (hidden,), f32),
        m2=0.1 * jax.random.normal(ks[10], (hidden,), f32),
        v2=0.5 + jnp.abs(jax.random.normal(ks[11], (hidden,), f32)),
        g3=1.0 + 0.1 * jax.random.normal(ks[12], (Cout,), f32),
        be3=0.1 * jax.random.normal(ks[13], (Cout,), f32),
        m3=0.1 * jax.random.normal(ks[14], (Cout,), f32),
        v3=0.5 + jnp.abs(jax.random.normal(ks[15], (Cout,), f32)),
    )

    out_nchw = jax.block_until_ready(
        mv2_block(x_nchw, params, expansion=expansion))

    ref = jax.block_until_ready(ref_forward(x_nchw, params, use_res=use_res))
    assert out_nchw.shape == (N, Cout, H, W)
    assert jnp.allclose(out_nchw, ref, atol=1e-4, rtol=1e-4), (
        float(jnp.max(jnp.abs(out_nchw - ref))))

    print("KERNEL_OK")
</pallas_src>

<mosaic_0001>
module attributes {stable_mosaic.version = 11 : i64} {
  func.func @mv2_kernel(%arg0: memref<4x512xf32, #tpu.memory_space<vmem>>, %arg1: memref<4x8x512xf32, #tpu.memory_space<vmem>>, %arg2: memref<8x512xf32, #tpu.memory_space<vmem>>, %arg3: memref<9x8x512xf32, #tpu.memory_space<vmem>>, %arg4: memref<8x512xf32, #tpu.memory_space<vmem>>, %arg5: memref<8x4x512xf32, #tpu.memory_space<vmem>>, %arg6: memref<4x512xf32, #tpu.memory_space<vmem>>, %arg7: memref<4x512xf32, #tpu.memory_space<vmem>>, %arg8: memref<4x512xf32, #tpu.memory_space<vmem>>) attributes {dimension_semantics = [], scalar_prefetch = 0 : i64, scratch_operands = 0 : i64, tpu.core_type = #tpu.core_type<tc>} {
    %c0 = arith.constant 0 : index
    %c0_0 = arith.constant 0 : index
    %0 = vector.load %arg0[%c0, %c0_0] : memref<4x512xf32, #tpu.memory_space<vmem>>, vector<4x512xf32>
    %c0_1 = arith.constant 0 : index
    %c0_2 = arith.constant 0 : index
    %1 = vector.load %arg2[%c0_1, %c0_2] : memref<8x512xf32, #tpu.memory_space<vmem>>, vector<8x512xf32>
    %c0_3 = arith.constant 0 : index
    %c0_4 = arith.constant 0 : index
    %c0_5 = arith.constant 0 : index
    %2 = vector.load %arg1[%c0_3, %c0_4, %c0_5] : memref<4x8x512xf32, #tpu.memory_space<vmem>>, vector<1x8x512xf32>
    %3 = vector.shape_cast %2 : vector<1x8x512xf32> to vector<8x512xf32>
    %4 = vector.extract_strided_slice %0 {offsets = [0, 0], sizes = [1, 512], strides = [1, 1]} : vector<4x512xf32> to vector<1x512xf32>
    %5 = vector.broadcast %4 : vector<1x512xf32> to vector<8x512xf32>
    %6 = arith.mulf %3, %5 : vector<8x512xf32>
    %7 = arith.addf %1, %6 : vector<8x512xf32>
    %c1 = arith.constant 1 : index
    %c0_6 = arith.constant 0 : index
    %c0_7 = arith.constant 0 : index
    %8 = vector.load %arg1[%c1, %c0_6, %c0_7] : memref<4x8x512xf32, #tpu.memory_space<vmem>>, vector<1x8x512xf32>
    %9 = vector.shape_cast %8 : vector<1x8x512xf32> to vector<8x512xf32>
    %10 = vector.extract_strided_slice %0 {offsets = [1, 0], sizes = [1, 512], strides = [1, 1]} : vector<4x512xf32> to vector<1x512xf32>
    %11 = vector.broadcast %10 : vector<1x512xf32> to vector<8x512xf32>
    %12 = arith.mulf %9, %11 : vector<8x512xf32>
    %13 = arith.addf %7, %12 : vector<8x512xf32>
    %c2 = arith.constant 2 : index
    %c0_8 = arith.constant 0 : index
    %c0_9 = arith.constant 0 : index
    %14 = vector.load %arg1[%c2, %c0_8, %c0_9] : memref<4x8x512xf32, #tpu.memory_space<vmem>>, vector<1x8x512xf32>
    %15 = vector.shape_cast %14 : vector<1x8x512xf32> to vector<8x512xf32>
    %16 = vector.extract_strided_slice %0 {offsets = [2, 0], sizes = [1, 512], strides = [1, 1]} : vector<4x512xf32> to vector<1x512xf32>
    %17 = vector.broadcast %16 : vector<1x512xf32> to vector<8x512xf32>
    %18 = arith.mulf %15, %17 : vector<8x512xf32>
    %19 = arith.addf %13, %18 : vector<8x512xf32>
    %c3 = arith.constant 3 : index
    %c0_10 = arith.constant 0 : index
    %c0_11 = arith.constant 0 : index
    %20 = vector.load %arg1[%c3, %c0_10, %c0_11] : memref<4x8x512xf32, #tpu.memory_space<vmem>>, vector<1x8x512xf32>
    %21 = vector.shape_cast %20 : vector<1x8x512xf32> to vector<8x512xf32>
    %22 = vector.extract_strided_slice %0 {offsets = [3, 0], sizes = [1, 512], strides = [1, 1]} : vector<4x512xf32> to vector<1x512xf32>
    %23 = vector.broadcast %22 : vector<1x512xf32> to vector<8x512xf32>
    %24 = arith.mulf %21, %23 : vector<8x512xf32>
    %25 = arith.addf %19, %24 : vector<8x512xf32>
    %cst = arith.constant 5.000000e-01 : f32
    %26 = vector.broadcast %cst : f32 to vector<8x512xf32>
    %27 = arith.mulf %26, %25 : vector<8x512xf32>
    %28 = math.tanh %27 : vector<8x512xf32>
    %cst_12 = arith.constant 5.000000e-01 : f32
    %29 = vector.broadcast %cst_12 : f32 to vector<8x512xf32>
    %30 = arith.mulf %29, %28 : vector<8x512xf32>
    %cst_13 = arith.constant 5.000000e-01 : f32
    %31 = vector.broadcast %cst_13 : f32 to vector<8x512xf32>
    %32 = arith.addf %30, %31 : vector<8x512xf32>
    %33 = arith.mulf %25, %32 : vector<8x512xf32>
    %c17_i32 = arith.constant 17 : i32
    %34 = tpu.dynamic_rotate %33 by %c17_i32 dim 1 : vector<8x512xf32>, i32 -> vector<8x512xf32>
    %c0_14 = arith.constant 0 : index
    %c0_15 = arith.constant 0 : index
    %c0_16 = arith.constant 0 : index
    %35 = vector.load %arg3[%c0_14, %c0_15, %c0_16] : memref<9x8x512xf32, #tpu.memory_space<vmem>>, vector<1x8x512xf32>
    %36 = vector.shape_cast %35 : vector<1x8x512xf32> to vector<8x512xf32>
    %37 = arith.mulf %34, %36 : vector<8x512xf32>
    %c16_i32 = arith.constant 16 : i32
    %38 = tpu.dynamic_rotate %33 by %c16_i32 dim 1 : vector<8x512xf32>, i32 -> vector<8x512xf32>
    %c1_17 = arith.constant 1 : index
    %c0_18 = arith.constant 0 : index
    %c0_19 = arith.constant 0 : index
    %39 = vector.load %arg3[%c1_17, %c0_18, %c0_19] : memref<9x8x512xf32, #tpu.memory_space<vmem>>, vector<1x8x512xf32>
    %40 = vector.shape_cast %39 : vector<1x8x512xf32> to vector<8x512xf32>
    %41 = arith.mulf %38, %40 : vector<8x512xf32>
    %42 = arith.addf %37, %41 : vector<8x512xf32>
    %c15_i32 = arith.constant 15 : i32
    %43 = tpu.dynamic_rotate %33 by %c15_i32 dim 1 : vector<8x512xf32>, i32 -> vector<8x512xf32>
    %c2_20 = arith.constant 2 : index
    %c0_21 = arith.constant 0 : index
    %c0_22 = arith.constant 0 : index
    %44 = vector.load %arg3[%c2_20, %c0_21, %c0_22] : memref<9x8x512xf32, #tpu.memory_space<vmem>>, vector<1x8x512xf32>
    %45 = vector.shape_cast %44 : vector<1x8x512xf32> to vector<8x512xf32>
    %46 = arith.mulf %43, %45 : vector<8x512xf32>
    %47 = arith.addf %42, %46 : vector<8x512xf32>
    %c1_i32 = arith.constant 1 : i32
    %48 = tpu.dynamic_rotate %33 by %c1_i32 dim 1 : vector<8x512xf32>, i32 -> vector<8x512xf32>
    %c3_23 = arith.constant 3 : index
    %c0_24 = arith.constant 0 : index
    %c0_25 = arith.constant 0 : index
    %49 = vector.load %arg3[%c3_23, %c0_24, %c0_25] : memref<9x8x512xf32, #tpu.memory_space<vmem>>, vector<1x8x512xf32>
    %50 = vector.shape_cast %49 : vector<1x8x512xf32> to vector<8x512xf32>
    %51 = arith.mulf %48, %50 : vector<8x512xf32>
    %c4 = arith.constant 4 : index
    %c0_26 = arith.constant 0 : index
    %c0_27 = arith.constant 0 : index
    %52 = vector.load %arg3[%c4, %c0_26, %c0_27] : memref<9x8x512xf32, #tpu.memory_space<vmem>>, vector<1x8x512xf32>
    %53 = vector.shape_cast %52 : vector<1x8x512xf32> to vector<8x512xf32>
    %54 = arith.mulf %33, %53 : vector<8x512xf32>
    %55 = arith.addf %51, %54 : vector<8x512xf32>
    %c511_i32 = arith.constant 511 : i32
    %56 = tpu.dynamic_rotate %33 by %c511_i32 dim 1 : vector<8x512xf32>, i32 -> vector<8x512xf32>
    %c5 = arith.constant 5 : index
    %c0_28 = arith.constant 0 : index
    %c0_29 = arith.constant 0 : index
    %57 = vector.load %arg3[%c5, %c0_28, %c0_29] : memref<9x8x512xf32, #tpu.memory_space<vmem>>, vector<1x8x512xf32>
    %58 = vector.shape_cast %57 : vector<1x8x512xf32> to vector<8x512xf32>
    %59 = arith.mulf %56, %58 : vector<8x512xf32>
    %60 = arith.addf %55, %59 : vector<8x512xf32>
    %c497_i32 = arith.constant 497 : i32
    %61 = tpu.dynamic_rotate %33 by %c497_i32 dim 1 : vector<8x512xf32>, i32 -> vector<8x512xf32>
    %c6 = arith.constant 6 : index
    %c0_30 = arith.constant 0 : index
    %c0_31 = arith.constant 0 : index
    %62 = vector.load %arg3[%c6, %c0_30, %c0_31] : memref<9x8x512xf32, #tpu.memory_space<vmem>>, vector<1x8x512xf32>
    %63 = vector.shape_cast %62 : vector<1x8x512xf32> to vector<8x512xf32>
    %64 = arith.mulf %61, %63 : vector<8x512xf32>
    %c496_i32 = arith.constant 496 : i32
    %65 = tpu.dynamic_rotate %33 by %c496_i32 dim 1 : vector<8x512xf32>, i32 -> vector<8x512xf32>
    %c7 = arith.constant 7 : index
    %c0_32 = arith.constant 0 : index
    %c0_33 = arith.constant 0 : index
    %66 = vector.load %arg3[%c7, %c0_32, %c0_33] : memref<9x8x512xf32, #tpu.memory_space<vmem>>, vector<1x8x512xf32>
    %67 = vector.shape_cast %66 : vector<1x8x512xf32> to vector<8x512xf32>
    %68 = arith.mulf %65, %67 : vector<8x512xf32>
    %69 = arith.addf %64, %68 : vector<8x512xf32>
    %c495_i32 = arith.constant 495 : i32
    %70 = tpu.dynamic_rotate %33 by %c495_i32 dim 1 : vector<8x512xf32>, i32 -> vector<8x512xf32>
    %c8 = arith.constant 8 : index
    %c0_34 = arith.constant 0 : index
    %c0_35 = arith.constant 0 : index
    %71 = vector.load %arg3[%c8, %c0_34, %c0_35] : memref<9x8x512xf32, #tpu.memory_space<vmem>>, vector<1x8x512xf32>
    %72 = vector.shape_cast %71 : vector<1x8x512xf32> to vector<8x512xf32>
    %73 = arith.mulf %70, %72 : vector<8x512xf32>
    %74 = arith.addf %69, %73 : vector<8x512xf32>
    %c0_36 = arith.constant 0 : index
    %c0_37 = arith.constant 0 : index
    %75 = vector.load %arg4[%c0_36, %c0_37] : memref<8x512xf32, #tpu.memory_space<vmem>>, vector<8x512xf32>
    %76 = arith.addf %47, %60 : vector<8x512xf32>
    %77 = arith.addf %75, %76 : vector<8x512xf32>
    %78 = arith.addf %77, %74 : vector<8x512xf32>
    %cst_38 = arith.constant 5.000000e-01 : f32
    %79 = vector.broadcast %cst_38 : f32 to vector<8x512xf32>
    %80 = arith.mulf %79, %78 : vector<8x512xf32>
    %81 = math.tanh %80 : vector<8x512xf32>
    %cst_39 = arith.constant 5.000000e-01 : f32
    %82 = vector.broadcast %cst_39 : f32 to vector<8x512xf32>
    %83 = arith.mulf %82, %81 : vector<8x512xf32>
    %cst_40 = arith.constant 5.000000e-01 : f32
    %84 = vector.broadcast %cst_40 : f32 to vector<8x512xf32>
    %85 = arith.addf %83, %84 : vector<8x512xf32>
    %86 = arith.mulf %78, %85 : vector<8x512xf32>
    %c0_41 = arith.constant 0 : index
    %c0_42 = arith.constant 0 : index
    %c0_43 = arith.constant 0 : index
    %87 = vector.load %arg5[%c0_41, %c0_42, %c0_43] : memref<8x4x512xf32, #tpu.memory_space<vmem>>, vector<1x4x512xf32>
    %88 = vector.shape_cast %87 : vector<1x4x512xf32> to vector<4x512xf32>
    %89 = vector.extract_strided_slice %86 {offsets = [0, 0], sizes = [1, 512], strides = [1, 1]} : vector<8x512xf32> to vector<1x512xf32>
    %90 = vector.broadcast %89 : vector<1x512xf32> to vector<4x512xf32>
    %91 = arith.mulf %88, %90 : vector<4x512xf32>
    %c1_44 = arith.constant 1 : index
    %c0_45 = arith.constant 0 : index
    %c0_46 = arith.constant 0 : index
    %92 = vector.load %arg5[%c1_44, %c0_45, %c0_46] : memref<8x4x512xf32, #tpu.memory_space<vmem>>, vector<1x4x512xf32>
    %93 = vector.shape_cast %92 : vector<1x4x512xf32> to vector<4x512xf32>
    %94 = vector.extract_strided_slice %86 {offsets = [1, 0], sizes = [1, 512], strides = [1, 1]} : vector<8x512xf32> to vector<1x512xf32>
    %95 = vector.broadcast %94 : vector<1x512xf32> to vector<4x512xf32>
    %96 = arith.mulf %93, %95 : vector<4x512xf32>
    %97 = arith.addf %91, %96 : vector<4x512xf32>
    %c2_47 = arith.constant 2 : index
    %c0_48 = arith.constant 0 : index
    %c0_49 = arith.constant 0 : index
    %98 = vector.load %arg5[%c2_47, %c0_48, %c0_49] : memref<8x4x512xf32, #tpu.memory_space<vmem>>, vector<1x4x512xf32>
    %99 = vector.shape_cast %98 : vector<1x4x512xf32> to vector<4x512xf32>
    %100 = vector.extract_strided_slice %86 {offsets = [2, 0], sizes = [1, 512], strides = [1, 1]} : vector<8x512xf32> to vector<1x512xf32>
    %101 = vector.broadcast %100 : vector<1x512xf32> to vector<4x512xf32>
    %102 = arith.mulf %99, %101 : vector<4x512xf32>
    %103 = arith.addf %97, %102 : vector<4x512xf32>
    %c3_50 = arith.constant 3 : index
    %c0_51 = arith.constant 0 : index
    %c0_52 = arith.constant 0 : index
    %104 = vector.load %arg5[%c3_50, %c0_51, %c0_52] : memref<8x4x512xf32, #tpu.memory_space<vmem>>, vector<1x4x512xf32>
    %105 = vector.shape_cast %104 : vector<1x4x512xf32> to vector<4x512xf32>
    %106 = vector.extract_strided_slice %86 {offsets = [3, 0], sizes = [1, 512], strides = [1, 1]} : vector<8x512xf32> to vector<1x512xf32>
    %107 = vector.broadcast %106 : vector<1x512xf32> to vector<4x512xf32>
    %108 = arith.mulf %105, %107 : vector<4x512xf32>
    %109 = arith.addf %103, %108 : vector<4x512xf32>
    %c4_53 = arith.constant 4 : index
    %c0_54 = arith.constant 0 : index
    %c0_55 = arith.constant 0 : index
    %110 = vector.load %arg5[%c4_53, %c0_54, %c0_55] : memref<8x4x512xf32, #tpu.memory_space<vmem>>, vector<1x4x512xf32>
    %111 = vector.shape_cast %110 : vector<1x4x512xf32> to vector<4x512xf32>
    %112 = vector.extract_strided_slice %86 {offsets = [4, 0], sizes = [1, 512], strides = [1, 1]} : vector<8x512xf32> to vector<1x512xf32>
    %113 = vector.broadcast %112 : vector<1x512xf32> to vector<4x512xf32>
    %114 = arith.mulf %111, %113 : vector<4x512xf32>
    %115 = arith.addf %109, %114 : vector<4x512xf32>
    %c5_56 = arith.constant 5 : index
    %c0_57 = arith.constant 0 : index
    %c0_58 = arith.constant 0 : index
    %116 = vector.load %arg5[%c5_56, %c0_57, %c0_58] : memref<8x4x512xf32, #tpu.memory_space<vmem>>, vector<1x4x512xf32>
    %117 = vector.shape_cast %116 : vector<1x4x512xf32> to vector<4x512xf32>
    %118 = vector.extract_strided_slice %86 {offsets = [5, 0], sizes = [1, 512], strides = [1, 1]} : vector<8x512xf32> to vector<1x512xf32>
    %119 = vector.broadcast %118 : vector<1x512xf32> to vector<4x512xf32>
    %120 = arith.mulf %117, %119 : vector<4x512xf32>
    %121 = arith.addf %115, %120 : vector<4x512xf32>
    %c6_59 = arith.constant 6 : index
    %c0_60 = arith.constant 0 : index
    %c0_61 = arith.constant 0 : index
    %122 = vector.load %arg5[%c6_59, %c0_60, %c0_61] : memref<8x4x512xf32, #tpu.memory_space<vmem>>, vector<1x4x512xf32>
    %123 = vector.shape_cast %122 : vector<1x4x512xf32> to vector<4x512xf32>
    %124 = vector.extract_strided_slice %86 {offsets = [6, 0], sizes = [1, 512], strides = [1, 1]} : vector<8x512xf32> to vector<1x512xf32>
    %125 = vector.broadcast %124 : vector<1x512xf32> to vector<4x512xf32>
    %126 = arith.mulf %123, %125 : vector<4x512xf32>
    %127 = arith.addf %121, %126 : vector<4x512xf32>
    %c7_62 = arith.constant 7 : index
    %c0_63 = arith.constant 0 : index
    %c0_64 = arith.constant 0 : index
    %128 = vector.load %arg5[%c7_62, %c0_63, %c0_64] : memref<8x4x512xf32, #tpu.memory_space<vmem>>, vector<1x4x512xf32>
    %129 = vector.shape_cast %128 : vector<1x4x512xf32> to vector<4x512xf32>
    %130 = vector.extract_strided_slice %86 {offsets = [7, 0], sizes = [1, 512], strides = [1, 1]} : vector<8x512xf32> to vector<1x512xf32>
    %131 = vector.broadcast %130 : vector<1x512xf32> to vector<4x512xf32>
    %132 = arith.mulf %129, %131 : vector<4x512xf32>
    %133 = arith.addf %127, %132 : vector<4x512xf32>
    %cst_65 = arith.constant 5.000000e-01 : f32
    %134 = vector.broadcast %cst_65 : f32 to vector<4x512xf32>
    %135 = arith.mulf %134, %133 : vector<4x512xf32>
    %136 = math.tanh %135 : vector<4x512xf32>
    %cst_66 = arith.constant 5.000000e-01 : f32
    %137 = vector.broadcast %cst_66 : f32 to vector<4x512xf32>
    %138 = arith.mulf %137, %136 : vector<4x512xf32>
    %cst_67 = arith.constant 5.000000e-01 : f32
    %139 = vector.broadcast %cst_67 : f32 to vector<4x512xf32>
    %140 = arith.addf %138, %139 : vector<4x512xf32>
    %141 = arith.mulf %133, %140 : vector<4x512xf32>
    %c0_68 = arith.constant 0 : index
    %c0_69 = arith.constant 0 : index
    %142 = vector.load %arg6[%c0_68, %c0_69] : memref<4x512xf32, #tpu.memory_space<vmem>>, vector<4x512xf32>
    %143 = arith.mulf %141, %142 : vector<4x512xf32>
    %c0_70 = arith.constant 0 : index
    %c0_71 = arith.constant 0 : index
    %144 = vector.load %arg7[%c0_70, %c0_71] : memref<4x512xf32, #tpu.memory_space<vmem>>, vector<4x512xf32>
    %145 = arith.addf %143, %144 : vector<4x512xf32>
    %146 = arith.addf %145, %0 : vector<4x512xf32>
    %c0_72 = arith.constant 0 : index
    %c0_73 = arith.constant 0 : index
    %147 = vector.load %arg8[%c0_72, %c0_73] : memref<4x512xf32, #tpu.memory_space<vmem>>, vector<4x512xf32>
    tpu.vector_store %arg8[%c0_72, %c0_73], %146 {strides = array<i32>} : memref<4x512xf32, #tpu.memory_space<vmem>>, vector<4x512xf32>,
    return
  }
}

</mosaic_0001>

<bundles_post_ra>
// kernel: tpu_custom_call.1
= control target key start
LH: loop header
LB: loop body
LE: loop exit
PB: predicated region body
PF: predicated region fallthrough
CT: control target
= control target key end

     0   :  { %13 = vsyncpa [#allocation3], 0  ;;  %s1351_s0 = inlined_call_operand.hbm [shape: f32[4,512], index: 0, kind: input, shape index: {}]   ;;  %s1352_s1 = inlined_call_operand.hbm [shape: f32[4,8,512], index: 1, kind: input, shape index: {}]   ;;  %s1353_s2 = inlined_call_operand.hbm [shape: f32[8,512], index: 2, kind: input, shape index: {}]   ;;  %s1354_s3 = inlined_call_operand.hbm [shape: f32[9,8,512], index: 3, kind: input, shape index: {}]   ;;  %s1355_s4 = inlined_call_operand.hbm [shape: f32[8,512], index: 4, kind: input, shape index: {}]   ;;  %s1356_s5 = inlined_call_operand.hbm [shape: f32[8,4,512], index: 5, kind: input, shape index: {}]   ;;  %s1357_s6 = inlined_call_operand.hbm [shape: f32[4,512], index: 6, kind: input, shape index: {}]   ;;  %s1358_s7 = inlined_call_operand.hbm [shape: f32[4,512], index: 7, kind: input, shape index: {}]   ;;  %s1359_s8 = inlined_call_operand.hbm [shape: f32[4,512], index: 8, kind: output, shape index: {}]  }
   0x1   :  { %14 = vsyncpa [#allocation6], 0 }
   0x2   :  { %15 = vsyncpa [#allocation9], 0 }
   0x3   :  { %16 = vsyncpa [#allocation12], 0 }
   0x4   :  { %17 = vsyncpa [#allocation15], 0  ;;  %s34_s29 = sshll.u32 %s1352_s1, 4  ;;  %s35_s29 = int_to_ptr.hbm [resolvable:$true] %s34_s29 }
   0x5   :  { %18 = vsyncpa [#allocation4], 0  ;;  %s995_s30 = smov [#allocation5]   ;;  %s58_s12 = sshll.u32 %s1354_s3, 4  ;;  %s59_s12 = int_to_ptr.hbm [resolvable:$true] %s58_s12 }
   0x6   :  { %s36_s9 = sshll.u32 %s995_s30, 4  ;;  %s996_s13 = smov 512   ;;  %s37_s9 = int_to_ptr.vmem [resolvable:$true] %s36_s9 }
   0x7   :  { %s997_s14 = smov 32   ;;  %s998_s15 = smov [#allocation8]  }
   0x8   :  { %42 = dma.hbm_to_vmem [thread:$0]  %s35_s29, 2048, %s37_s9, [#allocation6], %s996_s13, %s996_s13, %s997_s14  }
   0x9   :  { %s60_s16 = sshll.u32 %s998_s15, 4  ;;  %s82_s19 = sshll.u32 %s1356_s5, 4  ;;  %s61_s16 = int_to_ptr.vmem [resolvable:$true] %s60_s16  ;;  %s83_s19 = int_to_ptr.hbm [resolvable:$true] %s82_s19 }
   0xa   :  { %66 = dma.hbm_to_vmem [thread:$0]  %s59_s12, 4608, %s61_s16, [#allocation9], %s996_s13, %s996_s13, %s997_s14  }
   0xb   :  { %s999_s1 = smov [#allocation11]   ;;  %s24_s3 = sshll.u32 %s1351_s0, 4  ;;  %s25_s3 = int_to_ptr.hbm [resolvable:$true] %s24_s3 }
   0xc   :  { %s84_s20 = sshll.u32 %s999_s1, 4  ;;  %s1000_s23 = smov 256   ;;  %s85_s20 = int_to_ptr.vmem [resolvable:$true] %s84_s20 }
   0xd   :  { %s1001_s24 = smov 16   ;;  %s1002_s25 = smov [#allocation2]  }
   0xe   :  { %90 = dma.hbm_to_vmem [thread:$0]  %s83_s19, 2048, %s85_s20, [#allocation12], %s1000_s23, %s1000_s23, %s1001_s24  }
   0xf   :  { %s26_s26 = sshll.u32 %s1002_s25, 4  ;;  %s48_s5 = sshll.u32 %s1353_s2, 4  ;;  %s27_s26 = int_to_ptr.vmem [resolvable:$true] %s26_s26  ;;  %s49_s5 = int_to_ptr.hbm [resolvable:$true] %s48_s5 }
  0x10   :  { %29 = dma.hbm_to_vmem [thread:$0]  %s25_s3, 256, %s27_s26, [#allocation3]  }
  0x11   :  { %s72_s9 = sshll.u32 %s1355_s4, 4  ;;  %s1003_s10 = smov [#allocation7]   ;;  %s73_s9 = int_to_ptr.hbm [resolvable:$true] %s72_s9 }
  0x12   :  { %s50_s0 = sshll.u32 %s1003_s10, 4  ;;  %s1004_s11 = smov [#allocation10]   ;;  %s51_s0 = int_to_ptr.vmem [resolvable:$true] %s50_s0 }
  0x13   :  { %53 = dma.hbm_to_vmem [thread:$0]  %s49_s5, 512, %s51_s0, [#allocation6]  }
  0x14   :  { %s74_s12 = sshll.u32 %s1004_s11, 4  ;;  %s96_s15 = sshll.u32 %s1357_s6, 4  ;;  %s75_s12 = int_to_ptr.vmem [resolvable:$true] %s74_s12  ;;  %s97_s15 = int_to_ptr.hbm [resolvable:$true] %s96_s15 }
  0x15   :  { %77 = dma.hbm_to_vmem [thread:$0]  %s73_s9, 512, %s75_s12, [#allocation9]  }
  0x16   :  { %s107_s17 = sshll.u32 %s1358_s7, 4  ;;  %s1005_s18 = smov [#allocation13]   ;;  %s108_s17 = int_to_ptr.hbm [resolvable:$true] %s107_s17 }
  0x17   :  { %s98_s4 = sshll.u32 %s1005_s18, 4  ;;  %s1006_s19 = smov [#allocation14]   ;;  %s99_s4 = int_to_ptr.vmem [resolvable:$true] %s98_s4 }
  0x18   :  { %101 = dma.hbm_to_vmem [thread:$0]  %s97_s15, 256, %s99_s4, [#allocation12]  }
  0x19   :  { %s109_s1 = sshll.u32 %s1006_s19, 4  ;;  %s110_s1 = int_to_ptr.vmem [resolvable:$true] %s109_s1 }
  0x1a   :  { %112 = dma.hbm_to_vmem [thread:$0]  %s108_s17, 256, %s110_s1, [#allocation15]  }
  0x1b   :  { %983 = dma.done.wait [#allocation3], 256  }
  0x1c   :  { %984 = vsyncadd [#allocation3], 4294967040 }
  0x1d   :  { %985 = dma.done.wait [#allocation6], 2560  }
  0x1e   :  { %986 = vsyncadd [#allocation6], 4294964736 }
  0x1f   :  { %987 = dma.done.wait [#allocation9], 5120  }
  0x20   :  { %988 = vsyncadd [#allocation9], 4294962176 }
  0x21   :  { %989 = dma.done.wait [#allocation12], 2304  }
  0x22   :  { %990 = vsyncadd [#allocation12], 4294964992 }
  0x23   :  { %991 = dma.done.wait [#allocation15], 256  }
  0x24   :  { %992 = vsyncadd [#allocation15], 4294967040  ;;  %v1085_v0 = vld [vmem:[#allocation2 + $0x8] sm:$0xff]  ;;  %v153_v1 = vld [vmem:[#allocation5 + $0x10] sm:$0xff]  ;;  %s1007_s6 = smov 17   ;;  %s1008_s7 = smov 1  }
  0x25   :  { %v159_v2 = vperm.slane %v1085_v0, 0  ;;  %v184_v3 = vperm.slane %v1085_v0, 1  ;;  %v209_v4 = vperm.slane %v1085_v0, 2  ;;  %v180_v5 = vld [vmem:[#allocation5 + $0x30] sm:$0xff]  ;;  %v234_v7 = vperm.slane %v1085_v0, 3  ;;  %v151_v18 = vld [vmem:[#allocation5] sm:$0xff] }
  0x26   :  { %v205_v6 = vld [vmem:[#allocation5 + $0x50] sm:$0xff]  ;;  %v160_v9 = vperm.slane %v1085_v0, 4  ;;  %v185_v10 = vperm.slane %v1085_v0, 5  ;;  %v178_v26 = vld [vmem:[#allocation5 + $0x20] sm:$0xff]  ;;  %v154_v34 = vld [vmem:[#allocation5 + $0x18] sm:$0xff]  ;;  %v210_v44 = vperm.slane %v1085_v0, 6 }
  0x27   :  { %v1091_v8 = vld [vmem:[#allocation2] sm:$0xff]  ;;  %v167_v11 = vperm.slane %v159_v2, 0  ;;  %v192_v12 = vperm.slane %v184_v3, 1  ;;  %v217_v13 = vperm.slane %v209_v4, 2  ;;  %v242_v17 = vperm.slane %v234_v7, 3  ;;  %v203_v27 = vld [vmem:[#allocation5 + $0x40] sm:$0xff] }
  0x28   :  { %v230_v14 = vld [vmem:[#allocation5 + $0x70] sm:$0xff]  ;;  %v157_v15 = vperm.slane %v1091_v8, 0  ;;  %v182_v19 = vperm.slane %v1091_v8, 1  ;;  %v207_v20 = vperm.slane %v1091_v8, 2  ;;  %v232_v21 = vperm.slane %v1091_v8, 3  ;;  %v228_v28 = vld [vmem:[#allocation5 + $0x60] sm:$0xff] }
  0x29   :  { %v149_v16 = vld [vmem:[#allocation7 + $0x10] sm:$0xff]  ;;  %v171_v22 = vmul.f32 %v167_v11, %v153_v1  ;;  %v196_v23 = vmul.f32 %v192_v12, %v180_v5  ;;  %v221_v24 = vmul.f32 %v217_v13, %v205_v6  ;;  %v246_v29 = vmul.f32 %v242_v17, %v230_v14  ;;  %v147_v30 = vld [vmem:[#allocation7] sm:$0xff]  ;;  %v181_v35 = vld [vmem:[#allocation5 + $0x38] sm:$0xff]  ;;  %s1009_s20 = smov 15   ;;  %s1010_s21 = smov 127  }
  0x2a   :  { %v165_v25 = vperm.slane %v157_v15, 0  ;;  %v190_v31 = vperm.slane %v182_v19, 1  ;;  %v215_v32 = vperm.slane %v207_v20, 2  ;;  %v240_v33 = vperm.slane %v232_v21, 3  ;;  %v150_v43 = vld [vmem:[#allocation7 + $0x18] sm:$0xff]  ;;  %v152_v58 = vld [vmem:[#allocation5 + $0x8] sm:$0xff] }
  0x2b   :  { %v175_v36 = vadd.f32 %v171_v22, %v149_v16  ;;  %v168_v38 = vperm.slane %v160_v9, 0  ;;  %v193_v39 = vperm.slane %v185_v10, 1  ;;  %v206_v49 = vld [vmem:[#allocation5 + $0x58] sm:$0xff]  ;;  %v218_v50 = vperm.slane %v210_v44, 2  ;;  %v179_v59 = vld [vmem:[#allocation5 + $0x28] sm:$0xff]  ;;  %s1011_s22 = smov 113  }
  0x2c   :  { %v169_v37 = vmul.f32 %v165_v25, %v151_v18  ;;  %v194_v40 = vmul.f32 %v190_v31, %v178_v26  ;;  %v219_v41 = vmul.f32 %v215_v32, %v203_v27  ;;  %v244_v42 = vmul.f32 %v240_v33, %v228_v28  ;;  %v231_v57 = vld [vmem:[#allocation5 + $0x78] sm:$0xff]  ;;  %v148_v5 = vld [vmem:[#allocation7 + $0x8] sm:$0xff]  ;;  %s1012_s3 = smov 112   ;;  %s1013_s23 = smov 111  }
  0x2d   :  { %v200_v45 = vadd.f32 %v196_v23, %v175_v36  ;;  %v172_v47 = vmul.f32 %v168_v38, %v154_v34  ;;  %v197_v48 = vmul.f32 %v193_v39, %v181_v35  ;;  %v235_v51 = vperm.slane %v1085_v0, 7  ;;  %v204_v6 = vld [vmem:[#allocation5 + $0x48] sm:$0xff]  ;;  %s713_s28 = sshll.u32 %s1359_s8, 4  ;;  %s714_s28 = int_to_ptr.hbm [resolvable:$true] %s713_s28 }
  0x2e   :  { %v173_v46 = vadd.f32 %v169_v37, %v147_v30  ;;  %v158_v52 = vperm.slane %v1091_v8, 4  ;;  %v183_v53 = vperm.slane %v1091_v8, 5  ;;  %v208_v60 = vperm.slane %v1091_v8, 6  ;;  %v229_v16 = vld [vmem:[#allocation5 + $0x68] sm:$0xff] }
  0x2f   :  { %v225_v54 = vadd.f32 %v221_v24, %v200_v45  ;;  %v176_v56 = vadd.f32 %v172_v47, %v150_v43  ;;  %v222_v61 = vmul.f32 %v218_v50, %v206_v49  ;;  %v243_v62 = vperm.slane %v235_v51, 3  ;;  %v310_v51 = vld [vmem:[#allocation8 + $0x28] sm:$0xff] }
  0x30   :  { %v198_v55 = vadd.f32 %v194_v40, %v173_v46  ;;  %v166_v63 = vperm.slane %v158_v52, 0  ;;  %v191_v1 = vperm.slane %v183_v53, 1  ;;  %v216_v7 = vperm.slane %v208_v60, 2 }
  0x31   :  { %v250_v2 = vadd.f32 %v246_v29, %v225_v54  ;;  %v201_v4 = vadd.f32 %v197_v48, %v176_v56  ;;  %v247_v9 = vmul.f32 %v243_v62, %v231_v57  ;;  %v233_v12 = vperm.slane %v1091_v8, 7  ;;  %v288_v56 = vld [vmem:[#allocation8 + $0x8] sm:$0xff] }
  0x32   :  { %v223_v3 = vadd.f32 %v219_v41, %v198_v55  ;;  %v170_v10 = vmul.f32 %v166_v63, %v152_v58  ;;  %v195_v11 = vmul.f32 %v191_v1, %v179_v59  ;;  %v220_v18 = vmul.f32 %v216_v7, %v204_v6  ;;  %v287_v1 = vld [vmem:[#allocation8] sm:$0xff] }
  0x33   :  { %v254_v13 = vmul.f32 0.5, %v250_v2  ;;  %v226_v15 = vadd.f32 %v222_v61, %v201_v4  ;;  %v241_v19 = vperm.slane %v233_v12, 3  ;;  %v280_v46 = vlaneseq }
  0x34   :  { %v248_v14 = vadd.f32 %v244_v42, %v223_v3  ;;  %v174_v17 = vadd.f32 %v170_v10, %v148_v5  ;;  %vm530_vm8 = vcmask 1043456  }
  0x35   :  { %747 = vtanh.f32 %v254_v13  ;;  %v251_v21 = vadd.f32 %v247_v9, %v226_v15  ;;  %v245_v23 = vmul.f32 %v241_v19, %v229_v16  ;;  %v1149_v48 = vand.u32 127, %v280_v46  ;;  %v289_v46 = vld [vmem:[#allocation8 + $0x10] sm:$0xff] }
  0x36   :  { %v252_v20 = vmul.f32 0.5, %v248_v14  ;;  %v199_v22 = vadd.f32 %v195_v11, %v174_v17 }
  0x37   :  { %v255_v24 = vmul.f32 0.5, %v251_v21  ;;  %vm303_vm0 = vcmp.lt.s32.totalorder %v1149_v48, 16  ;;  %vm282_vm1 = vcmp.lt.s32.totalorder %v1149_v48, 17  ;;  %vm355_vm2 = vcmp.lt.s32.totalorder %v1149_v48, 1 }
  0x38   :  { %749 = vtanh.f32 %v252_v20  ;;  %v224_v25 = vadd.f32 %v220_v18, %v199_v22  ;;  %vm390_vm3 = vcmp.lt.s32.totalorder %v1149_v48, 127  ;;  %vm329_vm4 = vcmp.lt.s32.totalorder %v1149_v48, 15 }
  0x39   :  { %751 = vtanh.f32 %v255_v24  ;;  %v361_v24 = vld [vmem:[#allocation8 + $0x60] sm:$0xff]  ;;  %vm438_vm5 = vcmp.lt.s32.totalorder %v1149_v48, 112  ;;  %vm416_vm6 = vcmp.lt.s32.totalorder %v1149_v48, 113  ;;  %vm464_vm7 = vcmp.lt.s32.totalorder %v1149_v48, 111 }
  0x3a   :  { %v249_v26 = vadd.f32 %v245_v23, %v224_v25  ;;  %v370_v25 = vld [vmem:[#allocation8 + $0x80] sm:$0xff] }
  0x3b   :  { %v748_v27 = vpop.eup %747 }
  0x3c   :  { %v262_v28 = vmul.f32 0.5, %v748_v27  ;;  %v253_v29 = vmul.f32 0.5, %v249_v26 }
  0x3e   :  { %v750_v30 = vpop.eup %749  ;;  %v266_v31 = vadd.f32 0.5, %v262_v28  ;;  %753 = vtanh.f32 %v253_v29  ;;  %v311_v28 = vld [vmem:[#allocation8 + $0x30] sm:$0xff]  ;;  %v396_v29 = vld [vmem:[#allocation8 + $0xa0] sm:$0xff] }
  0x3f   :  { %v260_v32 = vmul.f32 0.5, %v750_v30  ;;  %v752_v33 = vpop.eup %751 }
  0x40   :  { %v1105_v34 = vmul.f32 %v266_v31, %v250_v2  ;;  %v263_v36 = vmul.f32 0.5, %v752_v33  ;;  %v309_v2 = vld [vmem:[#allocation8 + $0x20] sm:$0xff] }
  0x41   :  { %v264_v35 = vadd.f32 0.5, %v260_v32  ;;  %v335_v31 = vld [vmem:[#allocation8 + $0x40] sm:$0xff] }
  0x42   :  { %276 = vrot.lane.b32.xlu1 %v1105_v34, %s1007_s6  ;;  %v267_v38 = vadd.f32 0.5, %v263_v36 }
  0x43   :  { %v1108_v37 = vmul.f32 %v264_v35, %v248_v14  ;;  %v373_v35 = vld [vmem:[#allocation8 + $0x98] sm:$0xff] }
  0x44   :  { %v754_v39 = vpop.eup %753  ;;  %v1113_v41 = vmul.f32 %v267_v38, %v251_v21 }
  0x45   :  { %272 = vrot.lane.b32.xlu0 %v1108_v37, %s1007_s6  ;;  %295 = vrot.lane.b32.xlu2 %v1108_v37, %s1001_s24  ;;  %v261_v40 = vmul.f32 0.5, %v754_v39  ;;  %v374_v38 = vmul.f32 %v370_v25, %v1108_v37  ;;  %v371_v39 = vld [vmem:[#allocation8 + $0x88] sm:$0xff]  ;;  %v422_v25 = vld [vmem:[#allocation8 + $0xc0] sm:$0xff] }
  0x47   :  { %v265_v42 = vadd.f32 0.5, %v261_v40  ;;  %v372_v40 = vld [vmem:[#allocation8 + $0x90] sm:$0xff] }
  0x49   :  { %v1115_v43 = vmul.f32 %v265_v42, %v249_v26  ;;  %v290_v42 = vld [vmem:[#allocation8 + $0x18] sm:$0xff] }
  0x4a   :  { %278 = vrot.lane.b32.xlu1 %v1113_v41, %s1007_s6 }
  0x4d   :  { %274 = vrot.lane.b32.xlu0 %v1115_v43, %s1007_s6  ;;  %297 = vrot.lane.b32.xlu2 %v1115_v43, %s1001_s24 }
  0x52   :  { %301 = vrot.lane.b32.xlu1 %v1113_v41, %s1001_s24 }
  0x55   :  { %299 = vrot.lane.b32.xlu0 %v1105_v34, %s1001_s24  ;;  %347 = vrot.lane.b32.xlu2 %v1108_v37, %s1008_s7  ;;  %s1014_s24 = smov [#allocation16]  }
  0x56   :  { %s711_s25 = sshll.u32 %s1014_s24, 4  ;;  %s712_s25 = int_to_ptr.vmem [resolvable:$true] %s711_s25 }
  0x5a   :  { %351 = vrot.lane.b32.xlu1 %v1105_v34, %s1008_s7 }
  0x5d   :  { %349 = vrot.lane.b32.xlu0 %v1115_v43, %s1008_s7  ;;  %353 = vrot.lane.b32.xlu2 %v1113_v41, %s1008_s7 }
  0x62   :  { %323 = vrot.lane.b32.xlu1 %v1115_v43, %s1009_s20 }
  0x65   :  { %321 = vrot.lane.b32.xlu0 %v1108_v37, %s1009_s20  ;;  %325 = vrot.lane.b32.xlu2 %v1105_v34, %s1009_s20 }
  0x6a   :  { %382 = vrot.lane.b32.xlu1 %v1108_v37, %s1010_s21 }
  0x6d   :  { %327 = vrot.lane.b32.xlu0 %v1113_v41, %s1009_s20  ;;  %384 = vrot.lane.b32.xlu2 %v1115_v43, %s1010_s21 }
  0x72   :  { %388 = vrot.lane.b32.xlu1 %v1113_v41, %s1010_s21 }
  0x75   :  { %386 = vrot.lane.b32.xlu0 %v1105_v34, %s1010_s21  ;;  %408 = vrot.lane.b32.xlu2 %v1108_v37, %s1011_s22 }
  0x7a   :  { %412 = vrot.lane.b32.xlu1 %v1105_v34, %s1011_s22 }
  0x7d   :  { %410 = vrot.lane.b32.xlu0 %v1115_v43, %s1011_s22  ;;  %414 = vrot.lane.b32.xlu2 %v1113_v41, %s1011_s22 }
  0x82   :  { %432 = vrot.lane.b32.xlu1 %v1115_v43, %s1012_s3 }
  0x85   :  { %430 = vrot.lane.b32.xlu0 %v1108_v37, %s1012_s3  ;;  %434 = vrot.lane.b32.xlu2 %v1105_v34, %s1012_s3 }
  0x8a   :  { %456 = vrot.lane.b32.xlu1 %v1108_v37, %s1013_s23  ;;  %v377_v37 = vmul.f32 %v373_v35, %v1113_v41  ;;  %v337_v35 = vld [vmem:[#allocation8 + $0x50] sm:$0xff] }
  0x8d   :  { %436 = vrot.lane.b32.xlu0 %v1113_v41, %s1012_s3  ;;  %458 = vrot.lane.b32.xlu2 %v1115_v43, %s1013_s23 }
  0x92   :  { %462 = vrot.lane.b32.xlu1 %v1113_v41, %s1013_s23  ;;  %v444_v41 = vld [vmem:[#allocation8 + $0xe0] sm:$0xff] }
  0x95   :  { %460 = vrot.lane.b32.xlu0 %v1105_v34, %s1013_s23 }
  0x9f   :  { %v296_v44 = vpop.permute.xlu2 %295 }
  0xa7   :  { %v298_v45 = vpop.permute.xlu2 %297 }
  0xa8   :  { %v306_v52 = vsel %vm303_vm0, %v296_v44, %v298_v45 }
  0xa9   :  { %v314_v57 = vmul.f32 %v310_v51, %v306_v52 }
  0xaf   :  { %v1151_v49 = vpop.permute.xlu2 %347 }
  0xb4   :  { %v277_v47 = vpop.permute.xlu1 %276 }
  0xb7   :  { %v273_v50 = vpop.permute.xlu0 %272  ;;  %v354_v59 = vpop.permute.xlu2 %353 }
  0xb8   :  { %v359_v26 = vsel %vm355_vm2, %v354_v59, %v1151_v49 }
  0xb9   :  { %v365_v36 = vmul.f32 %v361_v24, %v359_v26 }
  0xbc   :  { %v279_v53 = vpop.permute.xlu1 %278 }
  0xbd   :  { %v1157_v54 = vsel %vm282_vm1, %v277_v47, %v279_v53  ;;  %v286_v55 = vsel %vm282_vm1, %v279_v53, %v273_v50 }
  0xbe   :  { %v291_v5 = vmul.f32 %v287_v1, %v286_v55 }
  0xbf   :  { %v275_v58 = vpop.permute.xlu0 %274  ;;  %v1165_v10 = vpop.permute.xlu2 %325 }
  0xc0   :  { %v1159_v60 = vsel %vm282_vm1, %v275_v58, %v277_v47  ;;  %v285_v61 = vsel %vm282_vm1, %v273_v50, %v275_v58  ;;  %v312_v47 = vld [vmem:[#allocation8 + $0x38] sm:$0xff]  ;;  %v294_v58 = vmul.f32 %v290_v42, %v1157_v54 }
  0xc1   :  { %v292_v62 = vmul.f32 %v288_v56, %v285_v61  ;;  %v364_v50 = vld [vmem:[#allocation8 + $0x78] sm:$0xff]  ;;  %v375_v56 = vmul.f32 %v371_v39, %v1115_v43  ;;  %v378_v61 = vadd.f32 %v374_v38, %v365_v36  ;;  %v363_v43 = vld [vmem:[#allocation8 + $0x70] sm:$0xff]  ;;  %v470_v38 = vld [vmem:[#allocation8 + $0x100] sm:$0xff] }
  0xc3   :  { %v1161_v63 = vadd.f32 %v314_v57, %v292_v62  ;;  %v376_v57 = vmul.f32 %v372_v40, %v1105_v34  ;;  %v362_v62 = vld [vmem:[#allocation8 + $0x68] sm:$0xff] }
  0xc4   :  { %v302_v3 = vpop.permute.xlu1 %301 }
  0xc5   :  { %v307_v4 = vsel %vm303_vm0, %v302_v3, %v296_v44 }
  0xc6   :  { %v313_v6 = vmul.f32 %v309_v2, %v307_v4  ;;  %v293_v2 = vmul.f32 %v289_v46, %v1159_v60 }
  0xc7   :  { %v300_v7 = vpop.permute.xlu0 %299  ;;  %v1167_v13 = vpop.permute.xlu2 %384 }
  0xc8   :  { %v317_v9 = vadd.f32 %v313_v6, %v291_v5  ;;  %v305_v33 = vsel %vm303_vm0, %v298_v45, %v300_v7  ;;  %v304_v44 = vsel %vm303_vm0, %v300_v7, %v302_v3  ;;  %v399_v7 = vld [vmem:[#allocation8 + $0xb8] sm:$0xff] }
  0xc9   :  { %v315_v45 = vmul.f32 %v311_v28, %v305_v33  ;;  %v316_v3 = vmul.f32 %v312_v47, %v304_v44  ;;  %v338_v28 = vld [vmem:[#allocation8 + $0x58] sm:$0xff] }
  0xcb   :  { %v319_v24 = vadd.f32 %v315_v45, %v293_v2  ;;  %v445_v2 = vld [vmem:[#allocation8 + $0xe8] sm:$0xff] }
  0xcc   :  { %v352_v11 = vpop.permute.xlu1 %351 }
  0xcd   :  { %v356_v51 = vsel %vm355_vm2, %v352_v11, %v354_v59 }
  0xce   :  { %v368_v4 = vmul.f32 %v364_v50, %v356_v51  ;;  %v482_v50 = vld [vmem:[#allocation10] sm:$0xff] }
  0xcf   :  { %v350_v12 = vpop.permute.xlu0 %349  ;;  %v1173_v17 = vpop.permute.xlu2 %408 }
  0xd0   :  { %v358_v59 = vsel %vm355_vm2, %v1151_v49, %v350_v12  ;;  %v357_v54 = vsel %vm355_vm2, %v350_v12, %v352_v11  ;;  %v397_v11 = vld [vmem:[#allocation8 + $0xa8] sm:$0xff]  ;;  %v398_v12 = vld [vmem:[#allocation8 + $0xb0] sm:$0xff]  ;;  %v381_v39 = vadd.f32 %v377_v37, %v368_v4 }
  0xd1   :  { %v366_v60 = vmul.f32 %v362_v62, %v358_v59  ;;  %v367_v33 = vmul.f32 %v363_v43, %v357_v54  ;;  %v425_v43 = vld [vmem:[#allocation8 + $0xd8] sm:$0xff]  ;;  %v446_v54 = vld [vmem:[#allocation8 + $0xf0] sm:$0xff] }
  0xd3   :  { %v379_v51 = vadd.f32 %v375_v56, %v366_v60 }
  0xd4   :  { %v1169_v14 = vpop.permute.xlu1 %323 }
  0xd7   :  { %v1171_v15 = vpop.permute.xlu0 %321  ;;  %v1179_v21 = vpop.permute.xlu2 %414 }
  0xd8   :  { %v420_v59 = vsel %vm416_vm6, %v1179_v21, %v1173_v17 }
  0xdc   :  { %v383_v16 = vpop.permute.xlu1 %382 }
  0xdd   :  { %v393_v30 = vsel %vm390_vm3, %v383_v16, %v1167_v13 }
  0xde   :  { %v400_v52 = vmul.f32 %v396_v29, %v393_v30 }
  0xdf   :  { %v328_v18 = vpop.permute.xlu0 %327  ;;  %v1191_v27 = vpop.permute.xlu2 %434 }
  0xe0   :  { %v333_v32 = vsel %vm329_vm4, %v328_v18, %v1171_v15  ;;  %v404_v5 = vadd.f32 %v400_v52, %v378_v61 }
  0xe1   :  { %v339_v53 = vmul.f32 %v335_v31, %v333_v32  ;;  %v320_v32 = vadd.f32 %v316_v3, %v294_v58  ;;  %v380_v58 = vadd.f32 %v376_v57, %v367_v33  ;;  %v472_v33 = vld [vmem:[#allocation8 + $0x110] sm:$0xff] }
  0xe3   :  { %v343_v6 = vadd.f32 %v339_v53, %v317_v9  ;;  %v330_v9 = vsel %vm329_vm4, %v1165_v10, %v328_v18  ;;  %v331_v18 = vsel %vm329_vm4, %v1169_v14, %v1165_v10 }
  0xe4   :  { %v1175_v19 = vpop.permute.xlu1 %388  ;;  %v342_v44 = vmul.f32 %v338_v28, %v330_v9  ;;  %v341_v52 = vmul.f32 %v337_v35, %v331_v18 }
  0xe5   :  { %v394_v49 = vsel %vm390_vm3, %v1175_v19, %v383_v16 }
  0xe6   :  { %v403_v36 = vmul.f32 %v399_v7, %v394_v49  ;;  %v346_v57 = vadd.f32 %v342_v44, %v320_v32  ;;  %v471_v32 = vld [vmem:[#allocation8 + $0x108] sm:$0xff] }
  0xe7   :  { %v1177_v20 = vpop.permute.xlu0 %386  ;;  %v1242_v31 = vpop.permute.xlu2 %458 }
  0xe8   :  { %v391_v16 = vsel %vm390_vm3, %v1177_v20, %v1175_v19  ;;  %v392_v29 = vsel %vm390_vm3, %v1167_v13, %v1177_v20  ;;  %v336_v19 = vld [vmem:[#allocation8 + $0x48] sm:$0xff]  ;;  %v332_v13 = vsel %vm329_vm4, %v1171_v15, %v1169_v14  ;;  %v486_v20 = vadd.f32 %v404_v5, %v343_v6  ;;  %v447_v14 = vld [vmem:[#allocation8 + $0xf8] sm:$0xff] }
  0xe9   :  { %v401_v46 = vmul.f32 %v397_v11, %v392_v29  ;;  %v402_v47 = vmul.f32 %v398_v12, %v391_v16  ;;  %v340_v61 = vmul.f32 %v336_v19, %v332_v13  ;;  %v407_v62 = vadd.f32 %v403_v36, %v381_v39  ;;  %v423_v6 = vld [vmem:[#allocation8 + $0xc8] sm:$0xff]  ;;  %v485_v12 = vld [vmem:[#allocation10 + $0x18] sm:$0xff]  ;;  %v484_v19 = vld [vmem:[#allocation10 + $0x10] sm:$0xff] }
  0xea   :  { %v490_v4 = vadd.f32 %v486_v20, %v482_v50  ;;  %v345_v5 = vadd.f32 %v341_v52, %v319_v24  ;;  %v429_v24 = vmul.f32 %v425_v43, %v420_v59 }
  0xeb   :  { %v344_v49 = vadd.f32 %v340_v61, %v1161_v63  ;;  %v489_v60 = vadd.f32 %v407_v62, %v346_v57 }
  0xec   :  { %v1182_v22 = vpop.permute.xlu1 %412 }
  0xed   :  { %v493_v39 = vadd.f32 %v489_v60, %v485_v12 }
  0xef   :  { %v1185_v23 = vpop.permute.xlu0 %410 }
  0xf0   :  { %v419_v26 = vsel %vm416_vm6, %v1173_v17, %v1185_v23  ;;  %v418_v17 = vsel %vm416_vm6, %v1185_v23, %v1182_v22 }
  0xf1   :  { %v426_v40 = vmul.f32 %v422_v25, %v419_v26  ;;  %v424_v25 = vld [vmem:[#allocation8 + $0xd0] sm:$0xff]  ;;  %v417_v26 = vsel %vm416_vm6, %v1182_v22, %v1179_v21  ;;  %v483_v21 = vld [vmem:[#allocation10 + $0x8] sm:$0xff] }
  0xf2   :  { %v428_v35 = vmul.f32 %v424_v25, %v417_v26 }
  0xf4   :  { %v1206_v55 = vpop.permute.xlu1 %432 }
  0xf5   :  { %v440_v56 = vsel %vm438_vm5, %v1206_v55, %v1191_v27 }
  0xf6   :  { %v449_v28 = vmul.f32 %v445_v2, %v440_v56 }
  0xf7   :  { %v431_v1 = vpop.permute.xlu0 %430 }
  0xf8   :  { %v441_v34 = vsel %vm438_vm5, %v431_v1, %v1206_v55 }
  0xf9   :  { %v448_v30 = vmul.f32 %v444_v41, %v441_v34  ;;  %v405_v41 = vadd.f32 %v401_v46, %v379_v51  ;;  %v406_v34 = vadd.f32 %v402_v47, %v380_v58 }
  0xfb   :  { %v452_v53 = vadd.f32 %v448_v30, %v426_v40  ;;  %v487_v29 = vadd.f32 %v405_v41, %v344_v49  ;;  %v488_v23 = vadd.f32 %v406_v34, %v345_v5  ;;  %v427_v30 = vmul.f32 %v423_v6, %v418_v17 }
  0xfc   :  { %v457_v42 = vpop.permute.xlu1 %456 }
  0xfd   :  { %v467_v10 = vsel %vm464_vm7, %v457_v42, %v1242_v31  ;;  %v491_v47 = vadd.f32 %v487_v29, %v483_v21  ;;  %v538_v21 = vld [vmem:[#allocation11 + $0x10] sm:$0xff] }
  0xfe   :  { %v474_v45 = vmul.f32 %v470_v38, %v467_v10  ;;  %v453_v38 = vadd.f32 %v449_v28, %v427_v30  ;;  %v492_v10 = vadd.f32 %v488_v23, %v484_v19  ;;  %v519_v23 = vld [vmem:[#allocation11 + $0x8] sm:$0xff] }
  0xff   :  { %v437_v37 = vpop.permute.xlu0 %436 }
 0x100   :  { %v442_v15 = vsel %vm438_vm5, %v437_v37, %v431_v1  ;;  %v478_v3 = vadd.f32 %v474_v45, %v452_v53  ;;  %v439_v1 = vsel %vm438_vm5, %v1191_v27, %v437_v37  ;;  %v473_v27 = vld [vmem:[#allocation8 + $0x118] sm:$0xff] }
 0x101   :  { %v451_v55 = vmul.f32 %v447_v14, %v442_v15  ;;  %v450_v11 = vmul.f32 %v446_v54, %v439_v1 }
 0x102   :  { %v494_v7 = vadd.f32 %v490_v4, %v478_v3 }
 0x103   :  { %v455_v18 = vadd.f32 %v451_v55, %v429_v24  ;;  %v454_v40 = vadd.f32 %v450_v11, %v428_v35 }
 0x104   :  { %v498_v9 = vmul.f32 0.5, %v494_v7  ;;  %v463_v16 = vpop.permute.xlu1 %462 }
 0x105   :  { %v468_v63 = vsel %vm464_vm7, %v463_v16, %v457_v42 }
 0x106   :  { %755 = vtanh.f32 %v498_v9  ;;  %v477_v36 = vmul.f32 %v473_v27, %v468_v63  ;;  %v539_v63 = vld [vmem:[#allocation11 + $0x18] sm:$0xff] }
 0x107   :  { %v461_v22 = vpop.permute.xlu0 %460 }
 0x108   :  { %v465_v13 = vsel %vm464_vm7, %v461_v22, %v463_v16  ;;  %v466_v20 = vsel %vm464_vm7, %v1242_v31, %v461_v22  ;;  %v481_v42 = vadd.f32 %v477_v36, %v455_v18  ;;  %v518_v18 = vld [vmem:[#allocation11] sm:$0xff] }
 0x109   :  { %v475_v44 = vmul.f32 %v471_v32, %v466_v20  ;;  %v476_v46 = vmul.f32 %v472_v33, %v465_v13  ;;  %v559_v20 = vld [vmem:[#allocation11 + $0x20] sm:$0xff] }
 0x10a   :  { %v497_v50 = vadd.f32 %v493_v39, %v481_v42 }
 0x10b   :  { %v479_v51 = vadd.f32 %v475_v44, %v453_v38  ;;  %v480_v52 = vadd.f32 %v476_v46, %v454_v40  ;;  %v560_v40 = vld [vmem:[#allocation11 + $0x28] sm:$0xff] }
 0x10c   :  { %v756_v53 = vpop.eup %755  ;;  %v501_v45 = vmul.f32 0.5, %v497_v50 }
 0x10d   :  { %v495_v37 = vadd.f32 %v491_v47, %v479_v51  ;;  %v496_v58 = vadd.f32 %v492_v10, %v480_v52  ;;  %v506_v61 = vmul.f32 0.5, %v756_v53 }
 0x10e   :  { %757 = vtanh.f32 %v501_v45 }
 0x10f   :  { %v499_v62 = vmul.f32 0.5, %v495_v37  ;;  %v500_v14 = vmul.f32 0.5, %v496_v58  ;;  %v510_v15 = vadd.f32 0.5, %v506_v61 }
 0x111   :  { %759 = vtanh.f32 %v499_v62  ;;  %v1284_v31 = vmul.f32 %v510_v15, %v494_v7  ;;  %v580_v62 = vld [vmem:[#allocation11 + $0x30] sm:$0xff] }
 0x112   :  { %761 = vtanh.f32 %v500_v14 }
 0x113   :  { %v520_v41 = vperm.slane %v1284_v31, 0  ;;  %v540_v34 = vperm.slane %v1284_v31, 1  ;;  %v561_v1 = vperm.slane %v1284_v31, 2  ;;  %v582_v5 = vperm.slane %v1284_v31, 3 }
 0x114   :  { %v758_v48 = vpop.eup %757  ;;  %v603_v17 = vperm.slane %v1284_v31, 4  ;;  %v624_v7 = vperm.slane %v1284_v31, 5  ;;  %v645_v55 = vperm.slane %v1284_v31, 6 }
 0x115   :  { %v509_v59 = vmul.f32 0.5, %v758_v48  ;;  %v581_v48 = vld [vmem:[#allocation11 + $0x38] sm:$0xff] }
 0x117   :  { %v760_v2 = vpop.eup %759  ;;  %v513_v3 = vadd.f32 0.5, %v509_v59 }
 0x118   :  { %v762_v56 = vpop.eup %761  ;;  %v507_v4 = vmul.f32 0.5, %v760_v2 }
 0x119   :  { %v508_v57 = vmul.f32 0.5, %v762_v56  ;;  %v1288_v43 = vmul.f32 %v513_v3, %v497_v50 }
 0x11a   :  { %v511_v54 = vadd.f32 0.5, %v507_v4 }
 0x11b   :  { %v512_v6 = vadd.f32 0.5, %v508_v57  ;;  %v523_v60 = vperm.slane %v1288_v43, 0  ;;  %v543_v25 = vperm.slane %v1288_v43, 1  ;;  %v564_v26 = vperm.slane %v1288_v43, 2  ;;  %v602_v57 = vld [vmem:[#allocation11 + $0x48] sm:$0xff] }
 0x11c   :  { %v1295_v49 = vmul.f32 %v511_v54, %v495_v37  ;;  %v585_v27 = vperm.slane %v1288_v43, 3  ;;  %v606_v24 = vperm.slane %v1288_v43, 4  ;;  %v627_v9 = vperm.slane %v1288_v43, 5 }
 0x11d   :  { %v1300_v28 = vmul.f32 %v512_v6, %v496_v58  ;;  %v529_v12 = vrot.slane %v523_v60, 4  ;;  %v549_v29 = vrot.slane %v543_v25, 4  ;;  %v570_v38 = vrot.slane %v564_v26, 4  ;;  %v601_v60 = vld [vmem:[#allocation11 + $0x40] sm:$0xff] }
 0x11e   :  { %v521_v11 = vperm.slane %v1295_v49, 0  ;;  %v541_v16 = vperm.slane %v1295_v49, 1  ;;  %v562_v33 = vperm.slane %v1295_v49, 2  ;;  %v583_v39 = vperm.slane %v1295_v49, 3 }
 0x11f   :  { %v522_v30 = vperm.slane %v1300_v28, 0  ;;  %v542_v32 = vperm.slane %v1300_v28, 1  ;;  %v563_v35 = vperm.slane %v1300_v28, 2  ;;  %v584_v44 = vperm.slane %v1300_v28, 3 }
 0x120   :  { %v528_v36 = vrot.slane %v521_v11, 4  ;;  %v548_v22 = vrot.slane %v541_v16, 4  ;;  %v569_v42 = vrot.slane %v562_v33, 4  ;;  %v590_v14 = vrot.slane %v583_v39, 4  ;;  %v622_v11 = vld [vmem:[#allocation11 + $0x50] sm:$0xff] }
 0x121   :  { %v532_v19 = vsel %vm530_vm8, %v522_v30, %v529_v12  ;;  %v551_v13 = vsel %vm530_vm8, %v542_v32, %v549_v29  ;;  %v572_v45 = vsel %vm530_vm8, %v563_v35, %v570_v38  ;;  %v591_v59 = vrot.slane %v585_v27, 4 }
 0x122   :  { %v531_v46 = vsel %vm530_vm8, %v520_v41, %v528_v36  ;;  %v536_v47 = vmul.f32 %v532_v19, %v519_v23  ;;  %v550_v50 = vsel %vm530_vm8, %v540_v34, %v548_v22  ;;  %v555_v10 = vmul.f32 %v551_v13, %v539_v63  ;;  %v623_v23 = vld [vmem:[#allocation11 + $0x58] sm:$0xff]  ;;  %v643_v19 = vld [vmem:[#allocation11 + $0x60] sm:$0xff]  ;;  %v644_v13 = vld [vmem:[#allocation11 + $0x68] sm:$0xff] }
 0x123   :  { %v535_v51 = vmul.f32 %v531_v46, %v518_v18  ;;  %v554_v52 = vmul.f32 %v550_v50, %v538_v21  ;;  %v571_v53 = vsel %vm530_vm8, %v561_v1, %v569_v42  ;;  %v576_v61 = vmul.f32 %v572_v45, %v560_v40 }
 0x124   :  { %v557_v37 = vadd.f32 %v555_v10, %v536_v47  ;;  %v575_v58 = vmul.f32 %v571_v53, %v559_v20  ;;  %v604_v2 = vperm.slane %v1295_v49, 4  ;;  %v605_v56 = vperm.slane %v1300_v28, 4  ;;  %v665_v53 = vld [vmem:[#allocation11 + $0x78] sm:$0xff] }
 0x125   :  { %v556_v15 = vadd.f32 %v554_v52, %v535_v51  ;;  %v592_v4 = vsel %vm530_vm8, %v582_v5, %v590_v14  ;;  %v612_v41 = vrot.slane %v606_v24, 4  ;;  %v625_v34 = vperm.slane %v1295_v49, 5  ;;  %v664_v52 = vld [vmem:[#allocation11 + $0x70] sm:$0xff] }
 0x126   :  { %v578_v3 = vadd.f32 %v576_v61, %v557_v37  ;;  %v593_v1 = vsel %vm530_vm8, %v584_v44, %v591_v59  ;;  %v596_v6 = vmul.f32 %v592_v4, %v580_v62  ;;  %v611_v25 = vrot.slane %v604_v2, 4 }
 0x127   :  { %v577_v54 = vadd.f32 %v575_v58, %v556_v15  ;;  %v597_v26 = vmul.f32 %v593_v1, %v581_v48  ;;  %v614_v27 = vsel %vm530_vm8, %v605_v56, %v612_v41  ;;  %v626_v12 = vperm.slane %v1300_v28, 5  ;;  %v694_v41 = vld [vmem:[#allocation13] sm:$0xff] }
 0x128   :  { %v632_v16 = vrot.slane %v625_v34, 4  ;;  %v613_v5 = vsel %vm530_vm8, %v603_v17, %v611_v25  ;;  %v618_v24 = vmul.f32 %v614_v27, %v602_v57  ;;  %v633_v30 = vrot.slane %v627_v9, 4  ;;  %v699_v25 = vld [vmem:[#allocation14 + $0x8] sm:$0xff] }
 0x129   :  { %v598_v29 = vadd.f32 %v596_v6, %v577_v54  ;;  %v599_v63 = vadd.f32 %v597_v26, %v578_v3  ;;  %v617_v32 = vmul.f32 %v613_v5, %v601_v60  ;;  %v646_v35 = vperm.slane %v1295_v49, 6  ;;  %v695_v54 = vld [vmem:[#allocation13 + $0x8] sm:$0xff]  ;;  %v698_v6 = vld [vmem:[#allocation14] sm:$0xff] }
 0x12a   :  { %v634_v33 = vsel %vm530_vm8, %v624_v7, %v632_v16  ;;  %v635_v18 = vsel %vm530_vm8, %v626_v12, %v633_v30  ;;  %v648_v21 = vperm.slane %v1288_v43, 6  ;;  %v666_v22 = vperm.slane %v1284_v31, 7 }
 0x12b   :  { %v638_v36 = vmul.f32 %v634_v33, %v622_v11  ;;  %v619_v38 = vadd.f32 %v617_v32, %v598_v29  ;;  %v620_v17 = vadd.f32 %v618_v24, %v599_v63  ;;  %v639_v39 = vmul.f32 %v635_v18, %v623_v23 }
 0x12c   :  { %v653_v9 = vrot.slane %v646_v35, 4  ;;  %v647_v20 = vperm.slane %v1300_v28, 6  ;;  %v654_v40 = vrot.slane %v648_v21, 4  ;;  %v667_v7 = vperm.slane %v1295_v49, 7 }
 0x12d   :  { %v669_v42 = vperm.slane %v1288_v43, 7  ;;  %v640_v44 = vadd.f32 %v638_v36, %v619_v38  ;;  %v641_v46 = vadd.f32 %v639_v39, %v620_v17  ;;  %v668_v50 = vperm.slane %v1300_v28, 7 }
 0x12e   :  { %v655_v47 = vsel %vm530_vm8, %v645_v55, %v653_v9  ;;  %v656_v10 = vsel %vm530_vm8, %v647_v20, %v654_v40  ;;  %v674_v45 = vrot.slane %v667_v7, 4 }
 0x12f   :  { %v659_v51 = vmul.f32 %v655_v47, %v643_v19  ;;  %v675_v37 = vrot.slane %v669_v42, 4  ;;  %v660_v58 = vmul.f32 %v656_v10, %v644_v13 }
 0x130   :  { %v676_v49 = vsel %vm530_vm8, %v666_v22, %v674_v45 }
 0x131   :  { %v661_v61 = vadd.f32 %v659_v51, %v640_v44  ;;  %v677_v43 = vsel %vm530_vm8, %v668_v50, %v675_v37  ;;  %v662_v62 = vadd.f32 %v660_v58, %v641_v46  ;;  %v680_v14 = vmul.f32 %v676_v49, %v664_v52 }
 0x132   :  { %v681_v31 = vmul.f32 %v677_v43, %v665_v53 }
 0x133   :  { %v682_v15 = vadd.f32 %v680_v14, %v661_v61 }
 0x134   :  { %v683_v55 = vadd.f32 %v681_v31, %v662_v62 }
 0x135   :  { %v684_v48 = vmul.f32 0.5, %v682_v15 }
 0x136   :  { %v685_v28 = vmul.f32 0.5, %v683_v55 }
 0x137   :  { %763 = vtanh.f32 %v684_v48 }
 0x138   :  { %765 = vtanh.f32 %v685_v28 }
 0x13d   :  { %v764_v59 = vpop.eup %763 }
 0x13e   :  { %v766_v2 = vpop.eup %765  ;;  %v688_v56 = vmul.f32 0.5, %v764_v59 }
 0x13f   :  { %v689_v3 = vmul.f32 0.5, %v766_v2 }
 0x140   :  { %v690_v4 = vadd.f32 0.5, %v688_v56 }
 0x141   :  { %v691_v57 = vadd.f32 0.5, %v689_v3 }
 0x142   :  { %v692_v34 = vmul.f32 %v690_v4, %v682_v15 }
 0x143   :  { %v693_v1 = vmul.f32 %v691_v57, %v683_v55 }
 0x144   :  { %v696_v60 = vmul.f32 %v694_v41, %v692_v34 }
 0x145   :  { %v697_v26 = vmul.f32 %v695_v54, %v693_v1 }
 0x146   :  { %v700_v27 = vadd.f32 %v698_v6, %v696_v60 }
 0x147   :  { %v701_v11 = vadd.f32 %v699_v25, %v697_v26 }
 0x148   :  { %v702_v12 = vadd.f32 %v700_v27, %v1091_v8 }
 0x149   :  { %v703_v16 = vadd.f32 %v701_v11, %v1085_v0 }
 0x14a   :  { %704 = vst [vmem:[#allocation16] sm:$0xff] %v702_v12 }
 0x14b   :  { %705 = vst [vmem:[#allocation16 + $0x8] sm:$0xff] %v703_v16 }
 0x14c   :  { %716 = dma.vmem_to_hbm [thread:$0]  %s712_s25, 256, %s714_s28, [#allocation4]  }
 0x14d   :  { %993 = dma.done.wait [#allocation4], 256  }
 0x14e   :  { %994 = vsyncadd [#allocation4], 4294967040 }
 0x14f   :  { %721 = vsyncpa [#allocation3], 1 }
 0x150   :  { %722 = vsyncpa [#allocation6], 1 }
 0x151   :  { %723 = vsyncpa [#allocation9], 1 }
 0x152   :  { %724 = vsyncpa [#allocation12], 1 }
 0x153   :  { %725 = vsyncpa [#allocation15], 1 }
 0x154   :  { %726 = vsyncpa [#allocation4], 1 }

</bundles_post_ra>
